<compile_context>
chip_gen: v7x
topology: tpu7x:2x2x1
jax: 0.10.0
libtpu: 0.0.40
codegen_flags: <defaults>
</compile_context>

<pallas_src>
import math
import functools

import jax
import jax.numpy as jnp
from jax.experimental import pallas as pl
from jax.experimental.pallas import tpu as pltpu


# ---------------------------------------------------------------------------
# Tiling helpers
# ---------------------------------------------------------------------------
_TM_MAX = 512        # batch tile cap      (sublane axis, multiple of 8)
_TN_MAX = 512        # z_dim tile cap      (lane axis,    multiple of 128)
_TK_FULL_MAX = 1024  # keep the whole reduction in one block up to this size
_TK_TILE = 512       # K tile when the reduction has to be split (mult of 128)


def _round_up(x: int, m: int) -> int:
    return ((x + m - 1) // m) * m


def _choose_tile(dim: int, cap: int):
    """(padded_dim, tile).

    dim <= cap  -> full-dim block: no padding, no (8,128) alignment needed
                   (block equal to the full array dim is always legal).
    dim  > cap  -> cap-sized tile over a dim padded to a multiple of cap.
    """
    if dim <= cap:
        return dim, dim
    return _round_up(dim, cap), cap


def _maybe_pad2d(x, rows: int, cols: int):
    r, c = x.shape
    if (r, c) == (rows, cols):
        return x                      # no extra HBM pass
    return jnp.zeros((rows, cols), x.dtype).at[:r, :c].set(x)


# ---------------------------------------------------------------------------
# Kernels
# ---------------------------------------------------------------------------
def _style_unit_kernel_single_k(label_ref, style_ref, z_ref, o_ref):
    """One (tm, tn) output tile; whole reduction resident in the blocks.

    No accumulator scratch, no init/finalize branches: matmul -> bias add ->
    single lane-dense store.
    """
    s = jnp.dot(label_ref[...], style_ref[...],
                preferred_element_type=jnp.float32)
    o_ref[...] = (s + z_ref[...].astype(jnp.float32)).astype(o_ref.dtype)


def _style_unit_kernel_multi_k(label_ref, style_ref, z_ref, o_ref, acc_ref):
    """One (tm, tn) output tile; grid axis 2 is the data_n (K) reduction.

    Only used when num_programs(2) >= 2.  First step writes the accumulator
    directly (no zero-init); the last partial product is fused with the bias
    add so the final step skips an acc store + reload.
    """
    k = pl.program_id(2)
    nk = pl.num_programs(2)

    p = jnp.dot(label_ref[...], style_ref[...],
                preferred_element_type=jnp.float32)

    @pl.when(k == 0)
    def _():
        acc_ref[...] = p

    @pl.when(jnp.logical_and(k > 0, k < nk - 1))
    def _():
        acc_ref[...] = acc_ref[...] + p

    @pl.when(k == nk - 1)
    def _():
        o_ref[...] = (acc_ref[...] + p
                      + z_ref[...].astype(jnp.float32)).astype(o_ref.dtype)


# ---------------------------------------------------------------------------
# Wrapper (forward)
# ---------------------------------------------------------------------------
@functools.partial(
    jax.jit,
    static_argnames=("data_n", "force_pallas", "k_full_max", "k_tile",
                     "matmul_dtype"),
)
def style_unit_forward(z, label, style, *, data_n, force_pallas=False,
                       k_full_max=_TK_FULL_MAX, k_tile=_TK_TILE,
                       matmul_dtype=None):
    """JAX/Pallas equivalent of StyleUnit.forward."""
    if data_n == 1:
        # Same semantics as the PyTorch branch: pass-through.
        return z

    B, z_dim = z.shape
    assert label.shape == (B, data_n)
    assert style.shape == (data_n, z_dim)
    assert k_tile % 128 == 0

    # Optional bandwidth optimization (v6e/v7x): bf16 matmul operands,
    # f32 accumulation.  Prefer storing label/style in bf16 upstream.
    if matmul_dtype is not None:
        label = label.astype(matmul_dtype)
        style = style.astype(matmul_dtype)

    # Dispatch: for tiny problems a Pallas call is almost entirely fixed
    # overhead; let XLA fuse matmul + add instead.
    if not force_pallas and (B * data_n * z_dim) < (1 << 20):
        return (jnp.dot(label, style, preferred_element_type=jnp.float32)
                + z.astype(jnp.float32)).astype(z.dtype)

    # ---- tile selection (full-dim blocks whenever possible) ---------------
    B_p, tm = _choose_tile(B, _TM_MAX)          # sublane axis
    N_p, tn = _choose_tile(z_dim, _TN_MAX)      # lane axis
    if data_n <= k_full_max:
        K_p, tk = data_n, data_n                # whole reduction in one block
    else:
        K_p, tk = _round_up(data_n, k_tile), k_tile

    grid_m, grid_n, grid_k = B_p // tm, N_p // tn, K_p // tk

    # Pad only when a dim was actually enlarged (zero K-padding adds 0 to sum).
    label_p = _maybe_pad2d(label, B_p, K_p)
    style_p = _maybe_pad2d(style, K_p, N_p)
    z_p = _maybe_pad2d(z, B_p, N_p)

    # ---- advisory cost: bytes the kernel actually DMAs --------------------
    mm_item = jnp.dtype(label_p.dtype).itemsize
    z_item = jnp.dtype(z.dtype).itemsize
    cost = pl.CostEstimate(
        flops=2 * B_p * K_p * N_p,
        transcendentals=0,
        bytes_accessed=(grid_n * B_p * K_p * mm_item      # label, re-read per N tile
                        + grid_m * K_p * N_p * mm_item    # style, re-read per B tile
                        + 2 * B_p * N_p * z_item),        # z read + out write
    )

    out_shape = jax.ShapeDtypeStruct((B_p, N_p), z.dtype)
    vmem_limit = 48 * 1024 * 1024  # < v7x 64 MiB physical; lifts v5e 16 MiB default

    if grid_k == 1:
        out_p = pl.pallas_call(
            _style_unit_kernel_single_k,
            out_shape=out_shape,
            grid_spec=pltpu.PrefetchScalarGridSpec(
                num_scalar_prefetch=0,
                grid=(grid_m, grid_n),
                in_specs=[
                    pl.BlockSpec((tm, tk), lambda i, j: (i, 0)),   # label
                    pl.BlockSpec((tk, tn), lambda i, j: (0, j)),   # style
                    pl.BlockSpec((tm, tn), lambda i, j: (i, j)),   # z
                ],
                out_specs=pl.BlockSpec((tm, tn), lambda i, j: (i, j)),
            ),
            compiler_params=pltpu.CompilerParams(
                dimension_semantics=("parallel", "parallel"),
                vmem_limit_bytes=vmem_limit,
            ),
            cost_estimate=cost,
        )(label_p, style_p, z_p)
    else:
        out_p = pl.pallas_call(
            _style_unit_kernel_multi_k,
            out_shape=out_shape,
            grid_spec=pltpu.PrefetchScalarGridSpec(
                num_scalar_prefetch=0,
                grid=(grid_m, grid_n, grid_k),
                in_specs=[
                    pl.BlockSpec((tm, tk), lambda i, j, k: (i, k)),   # label
                    pl.BlockSpec((tk, tn), lambda i, j, k: (k, j)),   # style
                    pl.BlockSpec((tm, tn), lambda i, j, k: (i, j)),   # z (resident over k)
                ],
                out_specs=pl.BlockSpec((tm, tn), lambda i, j, k: (i, j)),
                scratch_shapes=[pltpu.VMEM((tm, tn), jnp.float32)],
            ),
            compiler_params=pltpu.CompilerParams(
                dimension_semantics=("parallel", "parallel", "arbitrary"),
                vmem_limit_bytes=vmem_limit,
            ),
            cost_estimate=cost,
        )(label_p, style_p, z_p)

    if (B_p, N_p) != (B, z_dim):
        out_p = out_p[:B, :z_dim]   # strip padding (static slice)
    return out_p


def init_style_param(key, data_n, z_dim, dtype=jnp.float32):
    """Matches StyleUnit.reset_parameters: uniform(-1/sqrt(z_dim), 1/sqrt(z_dim))."""
    stdv = 1.0 / math.sqrt(z_dim)
    return jax.random.uniform(
        key, (data_n, z_dim), dtype=dtype, minval=-stdv, maxval=stdv
    )


# ---------------------------------------------------------------------------
# Demo / self-test
# ---------------------------------------------------------------------------
if __name__ == "__main__":
    key = jax.random.PRNGKey(0)
    k_style, k_z, k_label, k_style2, k_label2 = jax.random.split(key, 5)

    # Small, forward-consistent shapes.
    B = 2        # batch
    data_n = 4   # number of styles / label width
    z_dim = 32   # latent dim

    style = init_style_param(k_style, data_n, z_dim)
    z = jax.random.normal(k_z, (B, z_dim), dtype=jnp.float32)
    label_idx = jax.random.randint(k_label, (B,), 0, data_n)
    label = jax.nn.one_hot(label_idx, data_n, dtype=jnp.float32)

    # 1) Single-K Pallas path (full-dim blocks, no padding, no accumulator).
    out = jax.block_until_ready(
        style_unit_forward(z, label, style, data_n=data_n, force_pallas=True)
    )
    ref = label @ style + z
    assert out.shape == (B, z_dim)
    assert jnp.allclose(out, ref, atol=1e-5, rtol=1e-5), "single-K pallas mismatch"

    # 2) Multi-K Pallas path, forced at small shapes via tiny K caps
    #    (data_n=200 > k_full_max=128 -> K padded to 256, grid_k=2, tk=128).
    data_n2 = 200
    style2 = init_style_param(k_style2, data_n2, z_dim)
    label2 = jax.random.normal(k_label2, (B, data_n2), dtype=jnp.float32)
    out2 = jax.block_until_ready(
        style_unit_forward(z, label2, style2, data_n=data_n2,
                           force_pallas=True, k_full_max=128, k_tile=128)
    )
    ref2 = label2 @ style2 + z
    assert out2.shape == (B, z_dim)
    assert jnp.allclose(out2, ref2, atol=1e-4, rtol=1e-4), "multi-K pallas mismatch"

    # 3) XLA-fused small-shape dispatch path.
    out_xla = jax.block_until_ready(
        style_unit_forward(z, label, style, data_n=data_n, force_pallas=False)
    )
    assert jnp.allclose(out_xla, ref, atol=1e-5, rtol=1e-5), "xla path mismatch"

    # 4) n == 1 pass-through branch.
    style1 = init_style_param(k_style, 1, z_dim)
    label1 = jnp.ones((B, 1), dtype=jnp.float32)
    out1 = jax.block_until_ready(style_unit_forward(z, label1, style1, data_n=1))
    assert jnp.allclose(out1, z)

    print("KERNEL_OK")
</pallas_src>

<mosaic_0001>
module attributes {stable_mosaic.version = 11 : i64} {
  func.func @_style_unit_kernel_single_k(%arg0: i32, %arg1: i32, %arg2: memref<2x4xf32, #tpu.memory_space<vmem>>, %arg3: memref<4x32xf32, #tpu.memory_space<vmem>>, %arg4: memref<2x32xf32, #tpu.memory_space<vmem>>, %arg5: memref<2x32xf32, #tpu.memory_space<vmem>>) attributes {dimension_semantics = [#tpu.dimension_semantics<parallel>, #tpu.dimension_semantics<parallel>], iteration_bounds = array<i64: 1, 1>, scalar_prefetch = 0 : i64, scratch_operands = 0 : i64, tpu.core_type = #tpu.core_type<tc>, window_params = [{transform_indices = @transform_0, window_bounds = array<i64: 2, 4>}, {transform_indices = @transform_1, window_bounds = array<i64: 4, 32>}, {transform_indices = @transform_2, window_bounds = array<i64: 2, 32>}, {transform_indices = @transform_3, window_bounds = array<i64: 2, 32>}]} {
    %c0 = arith.constant 0 : index
    %c0_0 = arith.constant 0 : index
    %0 = vector.load %arg2[%c0, %c0_0] : memref<2x4xf32, #tpu.memory_space<vmem>>, vector<2x4xf32>
    %c0_1 = arith.constant 0 : index
    %c0_2 = arith.constant 0 : index
    %1 = vector.load %arg3[%c0_1, %c0_2] : memref<4x32xf32, #tpu.memory_space<vmem>>, vector<4x32xf32>
    %cst = arith.constant dense<0.000000e+00> : vector<2x32xf32>
    %2 = tpu.matmul %0, %1, %cst {dimension_numbers = #tpu.dot_dimension_numbers<[1], [0], [0], [1], [0, 0, 1, 1], [], []>} : vector<2x4xf32>, vector<4x32xf32>, vector<2x32xf32> -> vector<2x32xf32>
    %c0_3 = arith.constant 0 : index
    %c0_4 = arith.constant 0 : index
    %3 = vector.load %arg4[%c0_3, %c0_4] : memref<2x32xf32, #tpu.memory_space<vmem>>, vector<2x32xf32>
    %4 = arith.addf %2, %3 : vector<2x32xf32>
    %c0_5 = arith.constant 0 : index
    %c0_6 = arith.constant 0 : index
    %5 = vector.load %arg5[%c0_5, %c0_6] : memref<2x32xf32, #tpu.memory_space<vmem>>, vector<2x32xf32>
    tpu.vector_store %arg5[%c0_5, %c0_6], %4 {strides = array<i32>} : memref<2x32xf32, #tpu.memory_space<vmem>>, vector<2x32xf32>,
    return
  }
  func.func @transform_0(%arg0: i32, %arg1: i32) -> (i32, i32) {
    %c0_i32 = arith.constant 0 : i32
    %c0_i32_0 = arith.constant 0 : i32
    return %arg0, %c0_i32 : i32, i32
  }
  func.func @transform_1(%arg0: i32, %arg1: i32) -> (i32, i32) {
    %c0_i32 = arith.constant 0 : i32
    %c0_i32_0 = arith.constant 0 : i32
    return %c0_i32, %arg1 : i32, i32
  }
  func.func @transform_2(%arg0: i32, %arg1: i32) -> (i32, i32) {
    %c0_i32 = arith.constant 0 : i32
    return %arg0, %arg1 : i32, i32
  }
  func.func @transform_3(%arg0: i32, %arg1: i32) -> (i32, i32) {
    %c0_i32 = arith.constant 0 : i32
    return %arg0, %arg1 : i32, i32
  }
}

</mosaic_0001>

<bundles_post_ra>
// kernel: style_unit_forward.1
= control target key start
LH: loop header
LB: loop body
LE: loop exit
PB: predicated region body
PF: predicated region fallthrough
CT: control target
= control target key end

     0   :  { %8 = vsyncpa [#allocation3], 0  ;;  %s240_s0 = inlined_call_operand.vmem [shape: f32[2,4], index: 0, kind: input, shape index: {}]   ;;  %s241_s1 = inlined_call_operand.vmem [shape: f32[4,32], index: 1, kind: input, shape index: {}]   ;;  %s242_s2 = inlined_call_operand.hbm [shape: f32[2,32], index: 2, kind: input, shape index: {}]   ;;  %s243_s3 = inlined_call_operand.hbm [shape: f32[2,32], index: 3, kind: output, shape index: {}]  }
   0x1   :  { %9 = vsyncpa [#allocation4], 0  ;;  %s186_s12 = smov [#allocation2]   ;;  %s138_s16 = scalar_lea.hbm %s242_s2, 32 }
   0x2   :  { %s20_s13 = sshll.u32 %s186_s12, 4  ;;  %p139_p0 = scmp.ne.s32.totalorder %s242_s2, %s138_s16  ;;  %s21_s13 = int_to_ptr.vmem [resolvable:$true] %s20_s13 }
   0x3   :  { %p142_p1 = scmp.lt.u32.totalorder %s138_s16, %s242_s2 }
   0x5   :  { %p144_p2 = pnand %p142_p1, %p139_p0 }
   0x7   :  { %147 = shalt.err (!%p144_p2)
}
   0x8   :  { %s148_s21 = scalar_lea.vmem %s21_s13, 32  ;;  %p153_p4 = scmp.lt.s32.totalorder %s21_s13, %s21_s13 }
   0x9   :  { %p149_p3 = scmp.ne.s32.totalorder %s21_s13, %s148_s21  ;;  %p154_p5 = scmp.lt.s32.totalorder %s148_s21, %s148_s21 }
   0xb   :  { %p155_p6 = por %p154_p5, %p153_p4 }
   0xd   :  { %p156_p7 = pnand %p155_p6, %p149_p3 }
   0xf   :  { %159 = shalt.err (!%p156_p7)
}
  0x10   :  { %23 = dma.hbm_to_vmem [thread:$0]  %s242_s2, 32, %s21_s13, [#allocation3]  }
  0x11   :  { %182 = dma.done.wait [#allocation3], 32  }
  0x12   :  { %183 = vsyncadd [#allocation3], 4294967264  ;;  %v187_v0 = vmov 0.0   ;;  %vm188_vm0 = vmmov 0   ;;  %vm34_vm1 = vcmask 1043456   ;;  %vm30_vm2 = vcmask 31744  }
  0x13   :  { %129 = vmatprep.subr.mxu0 %v187_v0  ;;  %131 = vmatprep.mubr.msk.f32.mxu0 %vm188_vm0, %v187_v0  ;;  %v28_v1 = vld [vmem:[%s241_s1] sm:$0xf]  ;;  %v29_v3 = vld [vmem:[#allocation2] sm:$0x3]  ;;  %s189_s2 = smov [#allocation5]   ;;  %vm108_vm3 = vcmask 254976  }
  0x14   :  { %v27_v2 = vld [vmem:[%s240_s0] sm:$0x3]  ;;  %130 = vmatpush3.msk.msra.mxu0 %vm34_vm1, %v28_v1  ;;  %s116_s28 = sshll.u32 %s189_s2, 4  ;;  %s117_s28 = int_to_ptr.vmem [resolvable:$true] %s116_s28 }
  0x15   :  { %132 = vmatmul.mubr.msk.f32.vlgmr.msra.gmra.mrb[0].mxu0 %vm30_vm2, %v27_v2  ;;  %s160_s29 = scalar_lea.vmem %s117_s28, 32  ;;  %p165_p9 = scmp.lt.s32.totalorder %s117_s28, %s117_s28 }
  0x16   :  { %p161_p8 = scmp.ne.s32.totalorder %s117_s28, %s160_s29  ;;  %p166_p10 = scmp.lt.s32.totalorder %s160_s29, %s160_s29 }
  0x18   :  { %p167_p11 = por %p166_p10, %p165_p9 }
  0x1a   :  { %p168_p12 = pnand %p167_p11, %p161_p8 }
  0xe8   :  { %v104_v4 = vpop.f32.mrb[0].mxu0 }
  0xe9   :  { %v105_v5 = vadd.f32 %v104_v4, %v29_v3  ;;  %v133_v6 = vpop.f32.mrb[1].mxu0 }
  0xeb   :  { %109 = vst.msk [vmem:[#allocation5] sm:$0x3] %vm108_vm3, %v105_v5 }
  0xec   :  { %171 = shalt.err (!%p168_p12)
}
  0xed   :  { %s172_s30 = scalar_lea.hbm %s243_s3, 32 }
  0xee   :  { %p173_p13 = scmp.ne.s32.totalorder %s243_s3, %s172_s30  ;;  %p176_p0 = scmp.lt.u32.totalorder %s172_s30, %s243_s3 }
  0xf0   :  { %p178_p1 = pnand %p176_p0, %p173_p13 }
  0xf2   :  { %181 = shalt.err (!%p178_p1)
}
  0xf3   :  { %119 = dma.vmem_to_hbm [thread:$0]  %s117_s28, 32, %s243_s3, [#allocation4]  }
  0xf4   :  { %184 = dma.done.wait [#allocation4], 32  }
  0xf5   :  { %185 = vsyncadd [#allocation4], 4294967264 }
  0xf6   :  { %123 = vsyncpa [#allocation3], 1 }
  0xf7   :  { %124 = vsyncpa [#allocation4], 1 }

</bundles_post_ra>
